<compile_context>
chip_gen: v7x
topology: tpu7x:2x2x1
jax: 0.10.0
libtpu: 0.0.40
codegen_flags: <defaults>
</compile_context>

<pallas_src>
import functools

import jax
import jax.numpy as jnp
from jax.experimental import pallas as pl
from jax.experimental.pallas import tpu as pltpu

_SUBLANE = 8
_LANE = 128


def _round_up(x, m):
    return (x + m - 1) // m * m


def _combiner_kernel(z_ref, h_ref, w1t_ref, b1_ref, w23t_ref, b23_ref, out_ref,
                     *, z_dim):
    w1t = w1t_ref[...]
    w23t = w23t_ref[...]

    z = z_ref[...]
    h = h_ref[...].astype(jnp.float32)

    # lin_z_to_hidden + tanh, combine with RNN hidden state.
    pre_h = jnp.dot(z.astype(w1t.dtype), w1t,
                    preferred_element_type=jnp.float32) + b1_ref[...]
    # w23t was pre-scaled by 0.5 at prep time (exact), so the 0.5 * (...) factor
    # folds into the second matmul and we skip the explicit multiply here.
    h_comb2 = jnp.tanh(pre_h) + h            # == 2 * h_combined

    # Fused loc|scale projection: one MXU pass, one lane-dense output slab
    # (last dim is a multiple of 128 thanks to zero-padded weight columns).
    fused = jnp.dot(h_comb2.astype(w23t.dtype), w23t,
                    preferred_element_type=jnp.float32) + b23_ref[...]

    # Softplus (PyTorch default beta=1, threshold=20) on the scale lanes only,
    # via a lane mask — no in-vreg column slicing / concatenation.
    col = jax.lax.broadcasted_iota(jnp.int32, fused.shape, dimension=1)
    is_scale_lane = jnp.logical_and(col >= z_dim, col < 2 * z_dim)
    sp = jnp.where(fused > 20.0, fused,
                   jnp.log1p(jnp.exp(jnp.minimum(fused, 20.0))))
    out_ref[...] = jnp.where(is_scale_lane, sp, fused).astype(out_ref.dtype)


def prepare_combiner_params(params, *, use_bf16_matmul_operands=False):
    """One-time param repack (do NOT call per timestep).

    nn.Linear convention in `params`: weight [out, in], bias [out].
    Returns weights pre-transposed to [in, out], loc/scale projections fused
    along the output (lane) axis, zero-padded to a 128-lane multiple, and the
    0.5 h_combined factor folded into the fused weights.
    """
    w1 = jnp.asarray(params["w1"], jnp.float32)            # (rnn_dim, z_dim)
    rnn_dim, z_dim = w1.shape
    w1t = w1.T                                             # (z_dim, rnn_dim)
    b1 = jnp.asarray(params["b1"], jnp.float32).reshape(1, rnn_dim)

    # Fuse loc (w2) and scale (w3) projections: [rnn_dim, 2*z_dim], and fold
    # the 0.5 scaling of h_combined into the weights (exact power-of-two).
    w23t = 0.5 * jnp.concatenate(
        [jnp.asarray(params["w2"], jnp.float32).T,
         jnp.asarray(params["w3"], jnp.float32).T], axis=1)
    b23 = jnp.concatenate(
        [jnp.asarray(params["b2"], jnp.float32),
         jnp.asarray(params["b3"], jnp.float32)]).reshape(1, 2 * z_dim)

    # Lane-pad the fused projection so the kernel's output slab last dim is a
    # multiple of 128 (unmasked vst). Padded lanes see zero weights/bias and
    # are sliced off in the wrapper.
    out_pad = _round_up(2 * z_dim, _LANE)
    if out_pad != 2 * z_dim:
        w23t = jnp.pad(w23t, ((0, 0), (0, out_pad - 2 * z_dim)))
        b23 = jnp.pad(b23, ((0, 0), (0, out_pad - 2 * z_dim)))

    if use_bf16_matmul_operands:
        # v6e/v7x option: halves weight DMA; elementwise math stays f32.
        # Expect ~1e-2-level drift vs. the f32 reference.
        w1t = w1t.astype(jnp.bfloat16)
        w23t = w23t.astype(jnp.bfloat16)

    return {"w1t": w1t, "b1": b1, "w23t": w23t, "b23": b23}


def _choose_tile_b(B, tile_b_max):
    """Batch tile: single tile for small/medium B; for large B, >= 2 sublane-
    aligned tiles <= tile_b_max so the 'parallel' batch axis can shard across
    v7x's two TensorCores (neutral on single-TC v5e/v6e)."""
    if B <= max(tile_b_max // 2, _SUBLANE):
        return B
    n_tiles = max(2, pl.cdiv(B, tile_b_max))
    return min(tile_b_max, _round_up(pl.cdiv(B, n_tiles), _SUBLANE))


@functools.partial(jax.jit, static_argnames=("tile_b_max",))
def combiner_forward(z_t_1, h_rnn, prepared, *, tile_b_max=1024):
    """z_t_1: (B, z_dim), h_rnn: (B, rnn_dim), prepared: prepare_combiner_params()."""
    B, z_dim = z_t_1.shape
    rnn_dim = h_rnn.shape[1]

    w1t, b1 = prepared["w1t"], prepared["b1"]
    w23t, b23 = prepared["w23t"], prepared["b23"]
    out_pad = w23t.shape[1]                   # 2*z_dim rounded up to 128

    tile_b = _choose_tile_b(B, tile_b_max)
    grid = (pl.cdiv(B, tile_b),)              # ragged last tile handled by Pallas

    flops = 2 * B * (z_dim * rnn_dim + rnn_dim * out_pad)
    transcendentals = B * (rnn_dim + out_pad)     # tanh + exp/log1p lanes
    bytes_accessed = (
        4 * B * (z_dim + rnn_dim + out_pad)
        + w1t.size * w1t.dtype.itemsize + w23t.size * w23t.dtype.itemsize
        + 4 * (rnn_dim + out_pad))

    kernel = functools.partial(_combiner_kernel, z_dim=z_dim)

    fused_out = pl.pallas_call(
        kernel,
        out_shape=jax.ShapeDtypeStruct((B, out_pad), jnp.float32),
        grid_spec=pltpu.PrefetchScalarGridSpec(
            num_scalar_prefetch=0,
            grid=grid,
            in_specs=[
                pl.BlockSpec((tile_b, z_dim), lambda i: (i, 0)),     # z_{t-1}
                pl.BlockSpec((tile_b, rnn_dim), lambda i: (i, 0)),   # h_rnn
                pl.BlockSpec((z_dim, rnn_dim), lambda i: (0, 0)),    # W1^T (resident)
                pl.BlockSpec((1, rnn_dim), lambda i: (0, 0)),        # b1
                pl.BlockSpec((rnn_dim, out_pad), lambda i: (0, 0)),  # 0.5*[W2|W3]^T (padded)
                pl.BlockSpec((1, out_pad), lambda i: (0, 0)),        # [b2|b3] (padded)
            ],
            out_specs=pl.BlockSpec((tile_b, out_pad), lambda i: (i, 0)),
        ),
        compiler_params=pltpu.CompilerParams(
            dimension_semantics=("parallel",)),
        cost_estimate=pl.CostEstimate(
            flops=flops,
            transcendentals=transcendentals,
            bytes_accessed=bytes_accessed),
    )(z_t_1, h_rnn, w1t, b1, w23t, b23)

    loc = fused_out[:, :z_dim]
    scale = fused_out[:, z_dim:2 * z_dim]
    return loc, scale


def init_params(key, z_dim, rnn_dim):
    """Deterministic synthetic init mirroring nn.Linear shapes (weight: [out, in])."""
    ks = jax.random.split(key, 6)

    def u(k, shape, fan_in):
        bound = 1.0 / jnp.sqrt(fan_in)
        return jax.random.uniform(k, shape, jnp.float32, -bound, bound)

    return {
        "w1": u(ks[0], (rnn_dim, z_dim), z_dim),
        "b1": u(ks[1], (rnn_dim,), z_dim),
        "w2": u(ks[2], (z_dim, rnn_dim), rnn_dim),
        "b2": u(ks[3], (z_dim,), rnn_dim),
        "w3": u(ks[4], (z_dim, rnn_dim), rnn_dim),
        "b3": u(ks[5], (z_dim,), rnn_dim),
    }


def _reference_forward(z_t_1, h_rnn, p):
    """Pure-JAX reference matching the PyTorch module."""
    pre_h = z_t_1 @ p["w1"].T + p["b1"]
    h_combined = 0.5 * (jnp.tanh(pre_h) + h_rnn)
    loc = h_combined @ p["w2"].T + p["b2"]
    pre_s = h_combined @ p["w3"].T + p["b3"]
    scale = jnp.where(pre_s > 20.0, pre_s,
                      jnp.log1p(jnp.exp(jnp.minimum(pre_s, 20.0))))
    return loc, scale


if __name__ == "__main__":
    key = jax.random.PRNGKey(0)
    B, z_dim, rnn_dim = 8, 32, 64

    k_param, k_z, k_h = jax.random.split(key, 3)
    params = init_params(k_param, z_dim, rnn_dim)
    prepared = prepare_combiner_params(params)  # once, outside the time loop

    z_t_1 = jax.random.normal(k_z, (B, z_dim), jnp.float32)
    h_rnn = jax.random.normal(k_h, (B, rnn_dim), jnp.float32)

    loc, scale = combiner_forward(z_t_1, h_rnn, prepared)
    jax.block_until_ready((loc, scale))

    ref_loc, ref_scale = _reference_forward(z_t_1, h_rnn, params)
    assert loc.shape == (B, z_dim) and scale.shape == (B, z_dim)
    assert jnp.allclose(loc, ref_loc, atol=1e-5, rtol=1e-5)
    assert jnp.allclose(scale, ref_scale, atol=1e-5, rtol=1e-5)
    assert bool(jnp.all(scale > 0.0))

    print("KERNEL_OK")
</pallas_src>

<mosaic_0001>
module attributes {stable_mosaic.version = 11 : i64} {
  func.func @_combiner_kernel(%arg0: i32, %arg1: memref<8x32xf32, #tpu.memory_space<vmem>>, %arg2: memref<8x64xf32, #tpu.memory_space<vmem>>, %arg3: memref<32x64xf32, #tpu.memory_space<vmem>>, %arg4: memref<1x64xf32, #tpu.memory_space<vmem>>, %arg5: memref<64x128xf32, #tpu.memory_space<vmem>>, %arg6: memref<1x128xf32, #tpu.memory_space<vmem>>, %arg7: memref<8x128xf32, #tpu.memory_space<vmem>>) attributes {dimension_semantics = [#tpu.dimension_semantics<parallel>], iteration_bounds = array<i64: 1>, scalar_prefetch = 0 : i64, scratch_operands = 0 : i64, tpu.core_type = #tpu.core_type<tc>, window_params = [{transform_indices = @transform_0, window_bounds = array<i64: 8, 32>}, {transform_indices = @transform_1, window_bounds = array<i64: 8, 64>}, {pipeline_mode = #tpu.pipeline_mode<synchronous>, transform_indices = @transform_2, window_bounds = array<i64: 32, 64>}, {pipeline_mode = #tpu.pipeline_mode<synchronous>, transform_indices = @transform_3, window_bounds = array<i64: 1, 64>}, {pipeline_mode = #tpu.pipeline_mode<synchronous>, transform_indices = @transform_4, window_bounds = array<i64: 64, 128>}, {pipeline_mode = #tpu.pipeline_mode<synchronous>, transform_indices = @transform_5, window_bounds = array<i64: 1, 128>}, {transform_indices = @transform_6, window_bounds = array<i64: 8, 128>}]} {
    %c0 = arith.constant 0 : index
    %c0_0 = arith.constant 0 : index
    %0 = vector.load %arg3[%c0, %c0_0] : memref<32x64xf32, #tpu.memory_space<vmem>>, vector<32x64xf32>
    %c0_1 = arith.constant 0 : index
    %c0_2 = arith.constant 0 : index
    %1 = vector.load %arg5[%c0_1, %c0_2] : memref<64x128xf32, #tpu.memory_space<vmem>>, vector<64x128xf32>
    %c0_3 = arith.constant 0 : index
    %c0_4 = arith.constant 0 : index
    %2 = vector.load %arg1[%c0_3, %c0_4] : memref<8x32xf32, #tpu.memory_space<vmem>>, vector<8x32xf32>
    %c0_5 = arith.constant 0 : index
    %c0_6 = arith.constant 0 : index
    %3 = vector.load %arg2[%c0_5, %c0_6] : memref<8x64xf32, #tpu.memory_space<vmem>>, vector<8x64xf32>
    %cst = arith.constant dense<0.000000e+00> : vector<8x64xf32>
    %4 = tpu.matmul %2, %0, %cst {dimension_numbers = #tpu.dot_dimension_numbers<[1], [0], [0], [1], [0, 0, 1, 1], [], []>} : vector<8x32xf32>, vector<32x64xf32>, vector<8x64xf32> -> vector<8x64xf32>
    %c0_7 = arith.constant 0 : index
    %c0_8 = arith.constant 0 : index
    %5 = vector.load %arg4[%c0_7, %c0_8] : memref<1x64xf32, #tpu.memory_space<vmem>>, vector<1x64xf32>
    %6 = vector.broadcast %5 : vector<1x64xf32> to vector<8x64xf32>
    %7 = arith.addf %4, %6 : vector<8x64xf32>
    %8 = math.tanh %7 : vector<8x64xf32>
    %9 = arith.addf %8, %3 : vector<8x64xf32>
    %cst_9 = arith.constant dense<0.000000e+00> : vector<8x128xf32>
    %10 = tpu.matmul %9, %1, %cst_9 {dimension_numbers = #tpu.dot_dimension_numbers<[1], [0], [0], [1], [0, 0, 1, 1], [], []>} : vector<8x64xf32>, vector<64x128xf32>, vector<8x128xf32> -> vector<8x128xf32>
    %c0_10 = arith.constant 0 : index
    %c0_11 = arith.constant 0 : index
    %11 = vector.load %arg6[%c0_10, %c0_11] : memref<1x128xf32, #tpu.memory_space<vmem>>, vector<1x128xf32>
    %12 = vector.broadcast %11 : vector<1x128xf32> to vector<8x128xf32>
    %13 = arith.addf %10, %12 : vector<8x128xf32>
    %14 = tpu.iota {dimensions = array<i32: 1>} : vector<8x128xi32>
    %c32_i32 = arith.constant 32 : i32
    %15 = vector.broadcast %c32_i32 : i32 to vector<8x128xi32>
    %16 = arith.cmpi sge, %14, %15 : vector<8x128xi32>
    %c64_i32 = arith.constant 64 : i32
    %17 = vector.broadcast %c64_i32 : i32 to vector<8x128xi32>
    %18 = arith.cmpi slt, %14, %17 : vector<8x128xi32>
    %19 = arith.andi %16, %18 : vector<8x128xi1>
    %cst_12 = arith.constant 2.000000e+01 : f32
    %20 = vector.broadcast %cst_12 : f32 to vector<8x128xf32>
    %21 = arith.cmpf ogt, %13, %20 : vector<8x128xf32>
    %cst_13 = arith.constant 2.000000e+01 : f32
    %22 = vector.broadcast %cst_13 : f32 to vector<8x128xf32>
    %23 = arith.minimumf %13, %22 : vector<8x128xf32>
    %24 = math.exp %23 : vector<8x128xf32>
    %25 = math.log1p %24 : vector<8x128xf32>
    %26 = arith.select %21, %13, %25 : vector<8x128xi1>, vector<8x128xf32>
    %27 = arith.select %19, %26, %13 : vector<8x128xi1>, vector<8x128xf32>
    %c0_14 = arith.constant 0 : index
    %c0_15 = arith.constant 0 : index
    %28 = vector.load %arg7[%c0_14, %c0_15] : memref<8x128xf32, #tpu.memory_space<vmem>>, vector<8x128xf32>
    tpu.vector_store %arg7[%c0_14, %c0_15], %27 {strides = array<i32>} : memref<8x128xf32, #tpu.memory_space<vmem>>, vector<8x128xf32>,
    return
  }
  func.func @transform_0(%arg0: i32) -> (i32, i32) {
    %c0_i32 = arith.constant 0 : i32
    %c0_i32_0 = arith.constant 0 : i32
    return %arg0, %c0_i32 : i32, i32
  }
  func.func @transform_1(%arg0: i32) -> (i32, i32) {
    %c0_i32 = arith.constant 0 : i32
    %c0_i32_0 = arith.constant 0 : i32
    return %arg0, %c0_i32 : i32, i32
  }
  func.func @transform_2(%arg0: i32) -> (i32, i32) {
    %c0_i32 = arith.constant 0 : i32
    %c0_i32_0 = arith.constant 0 : i32
    %c0_i32_1 = arith.constant 0 : i32
    return %c0_i32, %c0_i32_0 : i32, i32
  }
  func.func @transform_3(%arg0: i32) -> (i32, i32) {
    %c0_i32 = arith.constant 0 : i32
    %c0_i32_0 = arith.constant 0 : i32
    %c0_i32_1 = arith.constant 0 : i32
    return %c0_i32, %c0_i32_0 : i32, i32
  }
  func.func @transform_4(%arg0: i32) -> (i32, i32) {
    %c0_i32 = arith.constant 0 : i32
    %c0_i32_0 = arith.constant 0 : i32
    %c0_i32_1 = arith.constant 0 : i32
    return %c0_i32, %c0_i32_0 : i32, i32
  }
  func.func @transform_5(%arg0: i32) -> (i32, i32) {
    %c0_i32 = arith.constant 0 : i32
    %c0_i32_0 = arith.constant 0 : i32
    %c0_i32_1 = arith.constant 0 : i32
    return %c0_i32, %c0_i32_0 : i32, i32
  }
  func.func @transform_6(%arg0: i32) -> (i32, i32) {
    %c0_i32 = arith.constant 0 : i32
    %c0_i32_0 = arith.constant 0 : i32
    return %arg0, %c0_i32 : i32, i32
  }
}

</mosaic_0001>

<bundles_post_ra>
// kernel: combiner_forward.1
= control target key start
LH: loop header
LB: loop body
LE: loop exit
PB: predicated region body
PF: predicated region fallthrough
CT: control target
= control target key end

     0   :  { %11 = vsyncpa [#allocation3], 0  ;;  %s556_s0 = inlined_call_operand.hbm [shape: f32[8,32], index: 0, kind: input, shape index: {}]   ;;  %s557_s1 = inlined_call_operand.hbm [shape: f32[8,64], index: 1, kind: input, shape index: {}]   ;;  %s558_s2 = inlined_call_operand.hbm [shape: f32[32,64], index: 2, kind: input, shape index: {}]   ;;  %s559_s3 = inlined_call_operand.vmem [shape: f32[1,64], index: 3, kind: input, shape index: {}]   ;;  %s560_s4 = inlined_call_operand.hbm [shape: f32[64,128], index: 4, kind: input, shape index: {}]   ;;  %s561_s5 = inlined_call_operand.vmem [shape: f32[1,128], index: 5, kind: input, shape index: {}]   ;;  %s562_s6 = inlined_call_operand.vmem [shape: f32[8,128], index: 6, kind: output, shape index: {}]  }
   0x1   :  { %12 = vsyncpa [#allocation5], 0 }
   0x2   :  { %13 = vsyncpa [#allocation8], 0  ;;  %s455_s21 = smov [#allocation4]   ;;  %s456_s23 = smov [#allocation2]  }
   0x3   :  { %s30_s22 = sshll.u32 %s455_s21, 4  ;;  %s20_s24 = sshll.u32 %s456_s23, 4  ;;  %s31_s22 = int_to_ptr.vmem [resolvable:$true] %s30_s22  ;;  %s21_s24 = int_to_ptr.vmem [resolvable:$true] %s20_s24 }
   0x4   :  { %s361_s27 = scalar_lea.hbm %s557_s1, 128 }
   0x5   :  { %p362_p0 = scmp.ne.s32.totalorder %s557_s1, %s361_s27  ;;  %p365_p1 = scmp.lt.u32.totalorder %s361_s27, %s557_s1 }
   0x7   :  { %p367_p2 = pnand %p365_p1, %p362_p0 }
   0x9   :  { %370 = shalt.err (!%p367_p2)
}
   0xa   :  { %s371_s8 = scalar_lea.vmem %s31_s22, 128  ;;  %p376_p4 = scmp.lt.s32.totalorder %s31_s22, %s31_s22 }
   0xb   :  { %p372_p3 = scmp.ne.s32.totalorder %s31_s22, %s371_s8  ;;  %p377_p5 = scmp.lt.s32.totalorder %s371_s8, %s371_s8 }
   0xd   :  { %p378_p6 = por %p377_p5, %p376_p4 }
   0xf   :  { %p379_p7 = pnand %p378_p6, %p372_p3 }
  0x11   :  { %382 = shalt.err (!%p379_p7)
}
  0x12   :  { %33 = dma.hbm_to_vmem [thread:$0]  %s557_s1, 128, %s31_s22, [#allocation5]  }
  0x13   :  { %s383_s13 = scalar_lea.hbm %s556_s0, 128 }
  0x14   :  { %p384_p8 = scmp.ne.s32.totalorder %s556_s0, %s383_s13  ;;  %p387_p9 = scmp.lt.u32.totalorder %s383_s13, %s556_s0 }
  0x16   :  { %p389_p10 = pnand %p387_p9, %p384_p8 }
  0x18   :  { %392 = shalt.err (!%p389_p10)
}
  0x19   :  { %s393_s18 = scalar_lea.vmem %s21_s24, 128  ;;  %p398_p12 = scmp.lt.s32.totalorder %s21_s24, %s21_s24 }
  0x1a   :  { %p394_p11 = scmp.ne.s32.totalorder %s21_s24, %s393_s18  ;;  %p399_p13 = scmp.lt.s32.totalorder %s393_s18, %s393_s18 }
  0x1c   :  { %p400_p0 = por %p399_p13, %p398_p12 }
  0x1e   :  { %p401_p1 = pnand %p400_p0, %p394_p11 }
  0x20   :  { %404 = shalt.err (!%p401_p1)
}
  0x21   :  { %23 = dma.hbm_to_vmem [thread:$0]  %s556_s0, 128, %s21_s24, [#allocation3]  }
  0x22   :  { %s457_s20 = smov [#allocation6]   ;;  %s405_s25 = scalar_lea.hbm %s558_s2, 512 }
  0x23   :  { %s39_s21 = sshll.u32 %s457_s20, 4  ;;  %p406_p2 = scmp.ne.s32.totalorder %s558_s2, %s405_s25  ;;  %s40_s21 = int_to_ptr.vmem [resolvable:$true] %s39_s21 }
  0x24   :  { %p409_p3 = scmp.lt.u32.totalorder %s405_s25, %s558_s2 }
  0x26   :  { %p411_p4 = pnand %p409_p3, %p406_p2 }
  0x28   :  { %414 = shalt.err (!%p411_p4)
}
  0x29   :  { %s415_s30 = scalar_lea.vmem %s40_s21, 512  ;;  %p420_p6 = scmp.lt.s32.totalorder %s40_s21, %s40_s21 }
  0x2a   :  { %p416_p5 = scmp.ne.s32.totalorder %s40_s21, %s415_s30  ;;  %p421_p7 = scmp.lt.s32.totalorder %s415_s30, %s415_s30 }
  0x2c   :  { %p422_p8 = por %p421_p7, %p420_p6 }
  0x2e   :  { %p423_p9 = pnand %p422_p8, %p416_p5 }
  0x30   :  { %426 = shalt.err (!%p423_p9)
}
  0x31   :  { %s458_s0 = smov 128   ;;  %s459_s24 = smov 8  }
  0x32   :  { %45 = dma.hbm_to_vmem [thread:$0]  %s558_s2, 512, %s40_s21, [#allocation5], %s458_s0, %s458_s0, %s459_s24  }
  0x33   :  { %s460_s9 = smov [#allocation7]   ;;  %s427_s13 = scalar_lea.hbm %s560_s4, 1024 }
  0x34   :  { %s53_s10 = sshll.u32 %s460_s9, 4  ;;  %p428_p10 = scmp.ne.s32.totalorder %s560_s4, %s427_s13  ;;  %s54_s10 = int_to_ptr.vmem [resolvable:$true] %s53_s10 }
  0x35   :  { %p431_p11 = scmp.lt.u32.totalorder %s427_s13, %s560_s4 }
  0x37   :  { %p433_p12 = pnand %p431_p11, %p428_p10 }
  0x39   :  { %436 = shalt.err (!%p433_p12)
}
  0x3a   :  { %s437_s18 = scalar_lea.vmem %s54_s10, 1024  ;;  %p442_p0 = scmp.lt.s32.totalorder %s54_s10, %s54_s10 }
  0x3b   :  { %p438_p13 = scmp.ne.s32.totalorder %s54_s10, %s437_s18  ;;  %p443_p1 = scmp.lt.s32.totalorder %s437_s18, %s437_s18 }
  0x3d   :  { %p444_p2 = por %p443_p1, %p442_p0 }
  0x3f   :  { %p445_p3 = pnand %p444_p2, %p438_p13 }
  0x41   :  { %448 = shalt.err (!%p445_p3)
}
  0x42   :  { %59 = dma.hbm_to_vmem [thread:$0]  %s560_s4, 1024, %s54_s10, [#allocation8], %s458_s0, %s458_s0, %s459_s24  }
  0x43   :  { %449 = dma.done.wait [#allocation3], 128  }
  0x44   :  { %450 = vsyncadd [#allocation3], 4294967168 }
  0x45   :  { %451 = dma.done.wait [#allocation5], 640  }
  0x46   :  { %452 = vsyncadd [#allocation5], 4294966656 }
  0x47   :  { %453 = dma.done.wait [#allocation8], 1024  }
  0x48   :  { %454 = vsyncadd [#allocation8], 4294966272  ;;  %v461_v0 = vmov 0.0|0.0   ;;  %vm462_vm0 = vmmov 0   ;;  %v463_v1 = vmov 0.0   ;;  %v74_v2 = vld [vmem:[#allocation6] sm:$0xff]  ;;  %v252_v36 = vlaneseq }
  0x49   :  { %328 = vmatprep.subr.bf16.mxu0 %v461_v0  ;;  %306 = vmatprep.mubr.msk.f32.mxu0 %vm462_vm0, %v463_v1  ;;  %v75_v3 = vld [vmem:[#allocation6 + $0x8] sm:$0xff]  ;;  %v76_v4 = vld [vmem:[#allocation6 + $0x10] sm:$0xff]  ;;  %v77_v6 = vld [vmem:[#allocation6 + $0x18] sm:$0xff]  ;;  %vm95_vm1 = vcmask 261120   ;;  %vm178_vm2 = vcmask 523264  }
  0x4a   :  { %334 = vmatprep.subr.bf16.mxu1 %v461_v0  ;;  %325 = vmatprep.mubr.msk.f32.mxu1 %vm462_vm0, %v463_v1  ;;  %v329_v5 = vpack.c.bf16 %v75_v3, %v74_v2  ;;  %v332_v7 = vpack.c.bf16 %v77_v6, %v76_v4  ;;  %v86_v8 = vld [vmem:[#allocation2] sm:$0xff]  ;;  %v78_v9 = vld [vmem:[#allocation7] sm:$0xff]  ;;  %v79_v10 = vld [vmem:[#allocation7 + $0x8] sm:$0xff]  ;;  %v253_v38 = vand.u32 127, %v252_v36 }
  0x4b   :  { %v335_v11 = vpack.c.bf16 %v79_v10, %v78_v9  ;;  %v80_v12 = vld [vmem:[#allocation7 + $0x10] sm:$0xff]  ;;  %v81_v13 = vld [vmem:[#allocation7 + $0x18] sm:$0xff]  ;;  %v82_v15 = vld [vmem:[#allocation7 + $0x20] sm:$0xff] }
  0x4c   :  { %330 = vmatpush3.bf16.msra.mxu0 %v329_v5  ;;  %v338_v14 = vpack.c.bf16 %v81_v13, %v80_v12  ;;  %v83_v16 = vld [vmem:[#allocation7 + $0x28] sm:$0xff]  ;;  %v84_v18 = vld [vmem:[#allocation7 + $0x30] sm:$0xff]  ;;  %v85_v19 = vld [vmem:[#allocation7 + $0x38] sm:$0xff]  ;;  %vm254_vm3 = vcmp.ge.s32.totalorder %v253_v38, 32  ;;  %vm255_vm4 = vcmp.lt.s32.totalorder %v253_v38, 64 }
  0x4d   :  { %331 = vmatprep.subr.bf16.mxu0 %v461_v0  ;;  %336 = vmatpush3.bf16.msra.mxu1 %v335_v11  ;;  %v341_v17 = vpack.c.bf16 %v83_v16, %v82_v15  ;;  %v344_v20 = vpack.c.bf16 %v85_v19, %v84_v18  ;;  %v280_v21 = vld [vmem:[%s559_s3] ss:$0 sm:$0xff]  ;;  %v87_v25 = vld [vmem:[#allocation4] sm:$0xff]  ;;  %vm256_vm5 = vmand %vm254_vm3, %vm255_vm4 }
  0x4e   :  { %337 = vmatprep.subr.bf16.mxu1 %v461_v0  ;;  %v282_v28 = vld [vmem:[%s561_s5] ss:$0 sm:$0xff] }
  0x50   :  { %333 = vmatpush3.bf16.msra.mxu0 %v332_v7 }
  0x51   :  { %339 = vmatpush3.bf16.msra.mxu1 %v338_v14 }
  0x52   :  { %340 = vmatprep.subr.bf16.mxu1 %v461_v0 }
  0x53   :  { %307 = vmatmul.mubr.msk.f32.vlgmr.msra.gmra.mrb[0].mxu0 %vm95_vm1, %v86_v8 }
  0x55   :  { %342 = vmatpush3.bf16.msra.mxu1 %v341_v17 }
  0x56   :  { %343 = vmatprep.subr.bf16.mxu1 %v461_v0 }
  0x59   :  { %345 = vmatpush3.bf16.msra.mxu1 %v344_v20 }
 0x126   :  { %v165_v22 = vpop.f32.mrb[0].mxu0 }
 0x127   :  { %v166_v23 = vadd.f32 %v280_v21, %v165_v22  ;;  %v308_v24 = vpop.f32.mrb[1].mxu0 }
 0x129   :  { %355 = vtanh.f32 %v166_v23 }
 0x133   :  { %v356_v26 = vpop.eup %355 }
 0x134   :  { %v170_v27 = vadd.f32 %v356_v26, %v87_v25 }
 0x136   :  { %326 = vmatmul.mubr.msk.f32.vlgmr.msra.gmra.mrb[0].mxu1 %vm178_vm2, %v170_v27 }
 0x209   :  { %v248_v29 = vpop.f32.mrb[0].mxu1 }
 0x20a   :  { %v249_v30 = vadd.f32 %v282_v28, %v248_v29  ;;  %v327_v31 = vpop.f32.mrb[1].mxu1 }
 0x20c   :  { %v258_v32 = vmin.f32 %v249_v30, 20.0  ;;  %vm257_vm7 = vcmp.gt.f32.partialorder %v249_v30, 20.0 }
 0x20e   :  { %v259_v33 = vmul.f32 1.442695, %v258_v32 }
 0x210   :  { %357 = vpow2.f32 %v259_v33 }
 0x21a   :  { %v358_v34 = vpop.eup %357 }
 0x21b   :  { %v261_v35 = vadd.f32 1.0, %v358_v34  ;;  %v264_v37 = vmul.f32 -0.5, %v358_v34  ;;  %v267_v40 = vand.u32 2147483647, %v358_v34 }
 0x21d   :  { %359 = vlog2.f32 %v261_v35  ;;  %v265_v39 = vadd.f32 1.0, %v264_v37  ;;  %vm268_vm6 = vcmp.lt.f32.partialorder %v267_v40, 0.0004427343 }
 0x21f   :  { %v266_v43 = vmul.f32 %v358_v34, %v265_v39 }
 0x227   :  { %v360_v41 = vpop.eup %359 }
 0x228   :  { %v263_v42 = vmul.f32 0.6931472, %v360_v41 }
 0x22a   :  { %v269_v44 = vsel %vm268_vm6, %v266_v43, %v263_v42 }
 0x22b   :  { %v270_v45 = vsel %vm257_vm7, %v249_v30, %v269_v44 }
 0x22c   :  { %v271_v46 = vsel %vm256_vm5, %v270_v45, %v249_v30 }
 0x22d   :  { %272 = vst [vmem:[%s562_s6] sm:$0xff] %v271_v46 }
 0x22e   :  { %277 = vsyncpa [#allocation3], 1 }
 0x22f   :  { %278 = vsyncpa [#allocation5], 1 }
 0x230   :  { %279 = vsyncpa [#allocation8], 1 }

</bundles_post_ra>
